<compile_context>
chip_gen: v7x
topology: tpu7x:2x2x1
jax: 0.10.0
libtpu: 0.0.40
codegen_flags: <defaults>
</compile_context>

<pallas_src>
import jax
import jax.numpy as jnp
from jax.experimental import pallas as pl
from jax.experimental.pallas import tpu as pltpu


def _round_up(x, m):
    return (x + m - 1) // m * m


# --------------------------------- kernels ----------------------------------

def _conv1d_fused_kernel(x_ref, w_ref, b_ref, o_ref):
    # Whole K reduction in one MXU pass: no scratch accumulator, no K grid axis.
    acc = jnp.dot(x_ref[...], w_ref[...], preferred_element_type=jnp.float32)
    o_ref[...] = (acc + b_ref[...].astype(jnp.float32)).astype(o_ref.dtype)


def _conv1d_split_kernel(x_ref, w_ref, b_ref, o_ref, acc_ref):
    # grid = (M tiles, N tiles, K tiles); K (reduction) is the last axis.
    k = pl.program_id(2)

    @pl.when(k == 0)
    def _():
        # Fold the bias into the accumulator init (no zero-fill, no extra add).
        acc_ref[...] = jnp.broadcast_to(
            b_ref[...].astype(jnp.float32), acc_ref.shape
        )

    acc_ref[...] += jnp.dot(
        x_ref[...], w_ref[...], preferred_element_type=jnp.float32
    )

    @pl.when(k == pl.num_programs(2) - 1)
    def _():
        o_ref[...] = acc_ref[...].astype(o_ref.dtype)


# --------------------------------- wrapper ----------------------------------

# Conservative VMEM budget for the double-buffered working set: fits every
# generation (v5e/v6e: 128 MiB physical, v7x: 64 MiB per TensorCore).
_VMEM_BUDGET = 40 * 1024 * 1024
_VMEM_LIMIT_CAP = 48 * 1024 * 1024


def conv1d(x, weight, bias, *, tm=512, tn=512, force_tk=None,
           cast_to_bf16=False):
    """GPT-2 Conv1D forward: x (..., nx) @ weight (nx, nf) + bias (nf,) -> (..., nf)."""
    orig_shape = x.shape
    K = orig_shape[-1]
    Kw, N = weight.shape
    assert K == Kw, f"weight first dim {Kw} != x last dim {K}"

    M = 1
    for d in orig_shape[:-1]:
        M *= d
    x2 = x.reshape(M, K)
    out_dtype = x.dtype

    # Optional: halve HBM traffic / unlock full bf16 MXU rate. Numerics differ
    # slightly from the f32 torch reference, so gated behind a flag.
    if cast_to_bf16:
        x2 = x2.astype(jnp.bfloat16)
        weight = weight.astype(jnp.bfloat16)
    dsize = jnp.dtype(x2.dtype).itemsize

    # Full-extent blocks for small dims (allowed by the (8,128) rule); tiles
    # otherwise.  M and N are never padded: the grid uses cdiv and Pallas
    # masks out-of-bounds writes on the non-reduction axes.
    tm = M if M <= tm else tm
    tn = N if N <= tn else tn

    # ---- choose the K blocking ---------------------------------------------
    def working_set(tk):
        # double-buffered inputs + double-buffered output + bias block
        return (2 * dsize * (tm * tk + tk * tn)
                + 2 * jnp.dtype(out_dtype).itemsize * tm * tn
                + 2 * dsize * tn)

    if force_tk is not None:
        tk = force_tk
    elif working_set(K) <= _VMEM_BUDGET:
        tk = K                      # fuse the whole reduction (common case)
    else:
        tk = None
        for cand in (2048, 1536, 1024, 768, 512, 384, 256, 128):
            if K % cand == 0 and working_set(cand) + 4 * tm * tn <= _VMEM_BUDGET:
                tk = cand           # divides K -> no padding needed
                break
        if tk is None:
            tk = 512                # pad K below (zero padding is exact)

    fused = tk >= K
    if fused:
        tk = K

    Kp = _round_up(K, tk)
    if Kp != K:
        # Only the reduction axis is ever padded: garbage there would corrupt
        # real outputs, whereas zero padding keeps the matmul exact.
        x2 = jnp.pad(x2, ((0, 0), (0, Kp - K)))
        weight = jnp.pad(weight, ((0, Kp - K), (0, 0)))

    b2 = bias.reshape(1, N)

    grid_m = pl.cdiv(M, tm)
    grid_n = pl.cdiv(N, tn)

    cost = pl.CostEstimate(
        flops=2 * M * N * K,
        bytes_accessed=int(dsize * (M * K + K * N) + dsize * N
                           + jnp.dtype(out_dtype).itemsize * M * N),
        transcendentals=0,
    )

    acc_bytes = 0 if fused else 4 * tm * tn
    vmem_limit = int(min(max(2 * (working_set(tk) + acc_bytes),
                             32 * 1024 * 1024),
                         _VMEM_LIMIT_CAP))

    if fused:
        out = pl.pallas_call(
            _conv1d_fused_kernel,
            out_shape=jax.ShapeDtypeStruct((M, N), out_dtype),
            grid_spec=pltpu.PrefetchScalarGridSpec(
                num_scalar_prefetch=0,
                grid=(grid_m, grid_n),
                in_specs=[
                    pl.BlockSpec((tm, Kp), lambda i, j: (i, 0)),
                    pl.BlockSpec((Kp, tn), lambda i, j: (0, j)),
                    pl.BlockSpec((1, tn), lambda i, j: (0, j)),
                ],
                out_specs=pl.BlockSpec((tm, tn), lambda i, j: (i, j)),
            ),
            compiler_params=pltpu.CompilerParams(
                dimension_semantics=("parallel", "parallel"),
                vmem_limit_bytes=vmem_limit,
            ),
            cost_estimate=cost,
        )(x2, weight, b2)
    else:
        out = pl.pallas_call(
            _conv1d_split_kernel,
            out_shape=jax.ShapeDtypeStruct((M, N), out_dtype),
            grid_spec=pltpu.PrefetchScalarGridSpec(
                num_scalar_prefetch=0,
                grid=(grid_m, grid_n, Kp // tk),
                in_specs=[
                    pl.BlockSpec((tm, tk), lambda i, j, k: (i, k)),
                    pl.BlockSpec((tk, tn), lambda i, j, k: (k, j)),
                    pl.BlockSpec((1, tn), lambda i, j, k: (0, j)),
                ],
                out_specs=pl.BlockSpec((tm, tn), lambda i, j, k: (i, j)),
                scratch_shapes=[pltpu.VMEM((tm, tn), jnp.float32)],
            ),
            compiler_params=pltpu.CompilerParams(
                dimension_semantics=("parallel", "parallel", "arbitrary"),
                vmem_limit_bytes=vmem_limit,
            ),
            cost_estimate=cost,
        )(x2, weight, b2)

    return out.reshape(orig_shape[:-1] + (N,))


def conv1d_ref(x, weight, bias):
    size_out = x.shape[:-1] + (weight.shape[-1],)
    y = jnp.dot(x.reshape(-1, x.shape[-1]), weight) + bias
    return y.reshape(size_out)


if __name__ == "__main__":
    key = jax.random.PRNGKey(0)
    kx, kw, kb, kx2, kw2, kx3 = jax.random.split(key, 6)

    # Shapes implied by the module: x (batch, seq, nx), weight (nx, nf), bias (nf,)
    batch, seq, nx, nf = 2, 8, 32, 64
    x = jax.random.normal(kx, (batch, seq, nx), dtype=jnp.float32)
    # Module init: weight ~ N(0, 0.02), bias = zeros
    weight = 0.02 * jax.random.normal(kw, (nx, nf), dtype=jnp.float32)
    bias = jnp.zeros((nf,), dtype=jnp.float32)

    out = jax.block_until_ready(conv1d(x, weight, bias))
    ref = conv1d_ref(x, weight, bias)
    assert out.shape == (batch, seq, nf) and out.dtype == x.dtype
    assert jnp.allclose(out, ref, atol=1e-4, rtol=1e-4)

    # Nonzero bias (same addmm semantics).
    bias2 = 0.02 * jax.random.normal(kb, (nf,), dtype=jnp.float32)
    out2 = jax.block_until_ready(conv1d(x, weight, bias2))
    assert jnp.allclose(out2, conv1d_ref(x, weight, bias2), atol=1e-4, rtol=1e-4)

    # Ragged M (600 > tm) and ragged N (640 > tn): exercises the padding-free
    # cdiv grid with masked edge blocks on the non-reduction axes.
    x_r = jax.random.normal(kx2, (5, 120, nx), dtype=jnp.float32)
    w_r = 0.02 * jax.random.normal(kw2, (nx, 640), dtype=jnp.float32)
    b_r = 0.02 * jax.random.normal(kb, (640,), dtype=jnp.float32)
    out3 = jax.block_until_ready(conv1d(x_r, w_r, b_r))
    assert jnp.allclose(out3, conv1d_ref(x_r, w_r, b_r), atol=2e-3, rtol=2e-3)

    # Force the split-K path (f32 accumulator with bias folded into the init).
    x_k = jax.random.normal(kx3, (batch, seq, 256), dtype=jnp.float32)
    w_k = 0.02 * jax.random.normal(kw2, (256, nf), dtype=jnp.float32)
    out4 = jax.block_until_ready(conv1d(x_k, w_k, bias2, force_tk=128))
    assert jnp.allclose(out4, conv1d_ref(x_k, w_k, bias2), atol=2e-3, rtol=2e-3)

    print("KERNEL_OK")
</pallas_src>

<mosaic_0001>
module attributes {stable_mosaic.version = 11 : i64} {
  func.func @_conv1d_fused_kernel(%arg0: i32, %arg1: i32, %arg2: memref<16x32xf32, #tpu.memory_space<vmem>>, %arg3: memref<32x64xf32, #tpu.memory_space<vmem>>, %arg4: memref<1x64xf32, #tpu.memory_space<vmem>>, %arg5: memref<16x64xf32, #tpu.memory_space<vmem>>) attributes {dimension_semantics = [#tpu.dimension_semantics<parallel>, #tpu.dimension_semantics<parallel>], iteration_bounds = array<i64: 1, 1>, scalar_prefetch = 0 : i64, scratch_operands = 0 : i64, tpu.core_type = #tpu.core_type<tc>, window_params = [{transform_indices = @transform_0, window_bounds = array<i64: 16, 32>}, {transform_indices = @transform_1, window_bounds = array<i64: 32, 64>}, {transform_indices = @transform_2, window_bounds = array<i64: 1, 64>}, {transform_indices = @transform_3, window_bounds = array<i64: 16, 64>}]} {
    %c0 = arith.constant 0 : index
    %c0_0 = arith.constant 0 : index
    %0 = vector.load %arg2[%c0, %c0_0] : memref<16x32xf32, #tpu.memory_space<vmem>>, vector<16x32xf32>
    %c0_1 = arith.constant 0 : index
    %c0_2 = arith.constant 0 : index
    %1 = vector.load %arg3[%c0_1, %c0_2] : memref<32x64xf32, #tpu.memory_space<vmem>>, vector<32x64xf32>
    %cst = arith.constant dense<0.000000e+00> : vector<16x64xf32>
    %2 = tpu.matmul %0, %1, %cst {dimension_numbers = #tpu.dot_dimension_numbers<[1], [0], [0], [1], [0, 0, 1, 1], [], []>} : vector<16x32xf32>, vector<32x64xf32>, vector<16x64xf32> -> vector<16x64xf32>
    %c0_3 = arith.constant 0 : index
    %c0_4 = arith.constant 0 : index
    %3 = vector.load %arg4[%c0_3, %c0_4] : memref<1x64xf32, #tpu.memory_space<vmem>>, vector<1x64xf32>
    %4 = vector.broadcast %3 : vector<1x64xf32> to vector<16x64xf32>
    %5 = arith.addf %2, %4 : vector<16x64xf32>
    %c0_5 = arith.constant 0 : index
    %c0_6 = arith.constant 0 : index
    %6 = vector.load %arg5[%c0_5, %c0_6] : memref<16x64xf32, #tpu.memory_space<vmem>>, vector<16x64xf32>
    tpu.vector_store %arg5[%c0_5, %c0_6], %5 {strides = array<i32>} : memref<16x64xf32, #tpu.memory_space<vmem>>, vector<16x64xf32>,
    return
  }
  func.func @transform_0(%arg0: i32, %arg1: i32) -> (i32, i32) {
    %c0_i32 = arith.constant 0 : i32
    %c0_i32_0 = arith.constant 0 : i32
    return %arg0, %c0_i32 : i32, i32
  }
  func.func @transform_1(%arg0: i32, %arg1: i32) -> (i32, i32) {
    %c0_i32 = arith.constant 0 : i32
    %c0_i32_0 = arith.constant 0 : i32
    return %c0_i32, %arg1 : i32, i32
  }
  func.func @transform_2(%arg0: i32, %arg1: i32) -> (i32, i32) {
    %c0_i32 = arith.constant 0 : i32
    %c0_i32_0 = arith.constant 0 : i32
    return %c0_i32, %arg1 : i32, i32
  }
  func.func @transform_3(%arg0: i32, %arg1: i32) -> (i32, i32) {
    %c0_i32 = arith.constant 0 : i32
    return %arg0, %arg1 : i32, i32
  }
}

</mosaic_0001>

<bundles_post_ra>
// kernel: tpu_custom_call.1
= control target key start
LH: loop header
LB: loop body
LE: loop exit
PB: predicated region body
PF: predicated region fallthrough
CT: control target
= control target key end

     0   :  { %8 = vsyncpa [#allocation3], 0  ;;  %s337_s0 = inlined_call_operand.hbm [shape: f32[16,32], index: 0, kind: input, shape index: {}]   ;;  %s338_s1 = inlined_call_operand.hbm [shape: f32[32,64], index: 1, kind: input, shape index: {}]   ;;  %s339_s2 = inlined_call_operand.vmem [shape: f32[1,64], index: 2, kind: input, shape index: {}]   ;;  %s340_s3 = inlined_call_operand.hbm [shape: f32[16,64], index: 3, kind: output, shape index: {}]  }
   0x1   :  { %9 = vsyncpa [#allocation6], 0 }
   0x2   :  { %10 = vsyncpa [#allocation4], 0  ;;  %s264_s12 = smov [#allocation2]   ;;  %s192_s16 = scalar_lea.hbm %s337_s0, 256 }
   0x3   :  { %s16_s13 = sshll.u32 %s264_s12, 4  ;;  %p193_p0 = scmp.ne.s32.totalorder %s337_s0, %s192_s16  ;;  %s17_s13 = int_to_ptr.vmem [resolvable:$true] %s16_s13 }
   0x4   :  { %p196_p1 = scmp.lt.u32.totalorder %s192_s16, %s337_s0 }
   0x6   :  { %p198_p2 = pnand %p196_p1, %p193_p0 }
   0x8   :  { %201 = shalt.err (!%p198_p2)
}
   0x9   :  { %s202_s21 = scalar_lea.vmem %s17_s13, 256  ;;  %p207_p4 = scmp.lt.s32.totalorder %s17_s13, %s17_s13 }
   0xa   :  { %p203_p3 = scmp.ne.s32.totalorder %s17_s13, %s202_s21  ;;  %p208_p5 = scmp.lt.s32.totalorder %s202_s21, %s202_s21 }
   0xc   :  { %p209_p6 = por %p208_p5, %p207_p4 }
   0xe   :  { %p210_p7 = pnand %p209_p6, %p203_p3 }
  0x10   :  { %213 = shalt.err (!%p210_p7)
}
  0x11   :  { %s265_s22 = smov 128   ;;  %s266_s23 = smov 8  }
  0x12   :  { %22 = dma.hbm_to_vmem [thread:$0]  %s337_s0, 256, %s17_s13, [#allocation3], %s265_s22, %s265_s22, %s266_s23  }
  0x13   :  { %s267_s26 = smov [#allocation5]   ;;  %s214_s30 = scalar_lea.hbm %s338_s1, 512 }
  0x14   :  { %s28_s27 = sshll.u32 %s267_s26, 4  ;;  %p215_p8 = scmp.ne.s32.totalorder %s338_s1, %s214_s30  ;;  %s29_s27 = int_to_ptr.vmem [resolvable:$true] %s28_s27 }
  0x15   :  { %p218_p9 = scmp.lt.u32.totalorder %s214_s30, %s338_s1 }
  0x17   :  { %p220_p10 = pnand %p218_p9, %p215_p8 }
  0x19   :  { %223 = shalt.err (!%p220_p10)
}
  0x1a   :  { %s224_s8 = scalar_lea.vmem %s29_s27, 512  ;;  %p229_p12 = scmp.lt.s32.totalorder %s29_s27, %s29_s27 }
  0x1b   :  { %p225_p11 = scmp.ne.s32.totalorder %s29_s27, %s224_s8  ;;  %p230_p13 = scmp.lt.s32.totalorder %s224_s8, %s224_s8 }
  0x1d   :  { %p231_p0 = por %p230_p13, %p229_p12 }
  0x1f   :  { %p232_p1 = pnand %p231_p0, %p225_p11 }
  0x21   :  { %235 = shalt.err (!%p232_p1)
}
  0x22   :  { %34 = dma.hbm_to_vmem [thread:$0]  %s338_s1, 512, %s29_s27, [#allocation6], %s265_s22, %s265_s22, %s266_s23  }
  0x23   :  { %258 = dma.done.wait [#allocation3], 256  }
  0x24   :  { %259 = vsyncadd [#allocation3], 4294967040 }
  0x25   :  { %260 = dma.done.wait [#allocation6], 512  }
  0x26   :  { %261 = vsyncadd [#allocation6], 4294966784  ;;  %vm56_vm0 = vcmask 261120   ;;  %v45_v0 = vld [vmem:[#allocation5] sm:$0xff]  ;;  %v46_v1 = vld [vmem:[#allocation5 + $0x8] sm:$0xff]  ;;  %s268_s11 = smov [#allocation7]  }
  0x27   :  { %v47_v2 = vld [vmem:[#allocation5 + $0x10] sm:$0xff]  ;;  %v179_v3 = vpack.c.bf16 %v46_v1, %v45_v0  ;;  %v48_v4 = vld [vmem:[#allocation5 + $0x18] sm:$0xff]  ;;  %s146_s12 = sshll.u32 %s268_s11, 4  ;;  %vm138_vm1 = vcmask 523264   ;;  %s147_s12 = int_to_ptr.vmem [resolvable:$true] %s146_s12 }
  0x28   :  { %v43_v5 = vld [vmem:[#allocation2] sm:$0xff]  ;;  %v183_v6 = vpack.c.bf16 %v48_v4, %v47_v2  ;;  %v44_v7 = vld [vmem:[#allocation2 + $0x8] sm:$0xff]  ;;  %s236_s13 = scalar_lea.vmem %s147_s12, 256  ;;  %p241_p3 = scmp.lt.s32.totalorder %s147_s12, %s147_s12 }
  0x29   :  { %176 = vmatprep.mubr.msk.f32.mxu0 %vm56_vm0, %v43_v5  ;;  %180 = vmatprep.subr.bf16.mxu0 %v179_v3  ;;  %v159_v8 = vld [vmem:[%s339_s2] ss:$0 sm:$0xff]  ;;  %p237_p2 = scmp.ne.s32.totalorder %s147_s12, %s236_s13  ;;  %p242_p4 = scmp.lt.s32.totalorder %s236_s13, %s236_s13 }
  0x2a   :  { %182 = vmatpush3.bf16.msra.mxu0 %v179_v3 }
  0x2b   :  { %184 = vmatprep.subr.bf16.mxu0 %v183_v6  ;;  %p243_p5 = por %p242_p4, %p241_p3 }
  0x2d   :  { %p244_p6 = pnand %p243_p5, %p237_p2 }
  0x2e   :  { %186 = vmatpush3.bf16.msra.mxu0 %v183_v6 }
  0x31   :  { %177 = vmatmul.mubr.msk.f32.vlgmr.msra.gmra.mrb[0].mxu0 %vm56_vm0, %v44_v7 }
 0x104   :  { %v178_v9 = vpop.f32.mrb[0].mxu0 }
 0x105   :  { %v135_v10 = vadd.f32 %v178_v9, %v159_v8  ;;  %v129_v11 = vpop.f32.mrb[1].mxu0 }
 0x106   :  { %v130_v12 = vadd.f32 %v159_v8, %v129_v11 }
 0x107   :  { %140 = vst.msk [vmem:[#allocation7 + $0x8] sm:$0xff] %vm138_vm1, %v135_v10 }
 0x108   :  { %139 = vst.msk [vmem:[#allocation7] sm:$0xff] %vm138_vm1, %v130_v12 }
 0x109   :  { %247 = shalt.err (!%p244_p6)
}
 0x10a   :  { %s248_s2 = scalar_lea.hbm %s340_s3, 256 }
 0x10b   :  { %p249_p7 = scmp.ne.s32.totalorder %s340_s3, %s248_s2  ;;  %p252_p8 = scmp.lt.u32.totalorder %s248_s2, %s340_s3 }
 0x10d   :  { %p254_p9 = pnand %p252_p8, %p249_p7 }
 0x10f   :  { %257 = shalt.err (!%p254_p9)
}
 0x110   :  { %152 = dma.vmem_to_hbm [thread:$0]  %s147_s12, 256, %s340_s3, [#allocation4], %s265_s22, %s265_s22, %s266_s23  }
 0x111   :  { %262 = dma.done.wait [#allocation4], 256  }
 0x112   :  { %263 = vsyncadd [#allocation4], 4294967040 }
 0x113   :  { %156 = vsyncpa [#allocation3], 1 }
 0x114   :  { %157 = vsyncpa [#allocation6], 1 }
 0x115   :  { %158 = vsyncpa [#allocation4], 1 }

</bundles_post_ra>
